<compile_context>
chip_gen: v7x
topology: tpu7x:2x2x1
jax: 0.10.0
libtpu: 0.0.40
codegen_flags: <defaults>
</compile_context>

<pallas_src>
import math
import functools

import jax
import jax.numpy as jnp
from jax import lax
from jax.experimental import pallas as pl
from jax.experimental.pallas import tpu as pltpu


# --------------------------------------------------------------------------- #
# Kernel
# --------------------------------------------------------------------------- #
def _qkv_attn_kernel(q_ref, k_ref, v_ref, o_ref, qs_ref, m_ref, l_ref, acc_ref,
                     *, scale2, mxu_dtype, exp_dtype, recip_approx):
    # q_ref:   [Hb, C, Tq]   (resident across the KV axis)
    # k_ref:   [Hb, C, Tk]   (current KV tile)
    # v_ref:   [Hb, C, Tk]
    # o_ref:   [Hb, C, Tq]   (written only on the last KV step)
    # qs_ref:  [Hb, C, Tq]   scaled + MXU-dtype Q cache   (scratch)
    # m_ref:   [Hb, 1, Tq]   running max                   (f32 scratch)
    # l_ref:   [Hb, 1, Tq]   running denominator           (f32 scratch)
    # acc_ref: [Hb, C, Tq]   running numerator             (f32 scratch)
    kv = pl.program_id(3)

    @pl.when(kv == 0)
    def _():
        # Fold (ch**-0.25)^2 once per Q tile (not per KV step) and pre-cast
        # the MXU operand; stays resident across the whole KV loop.
        qs_ref[...] = (q_ref[...].astype(jnp.float32) * scale2).astype(mxu_dtype)
        m_ref[...] = jnp.full(m_ref.shape, -jnp.inf, dtype=m_ref.dtype)
        l_ref[...] = jnp.zeros(l_ref.shape, dtype=l_ref.dtype)
        acc_ref[...] = jnp.zeros(acc_ref.shape, dtype=acc_ref.dtype)

    q = qs_ref[...]
    k = k_ref[...]
    if k.dtype != mxu_dtype:
        k = k.astype(mxu_dtype)
    v = v_ref[...]
    if v.dtype != mxu_dtype:
        v = v.astype(mxu_dtype)

    # scores_T[h, s, t] = sum_c k[h, c, s] * q[h, c, t]  ->  [Hb, Tk, Tq].
    # Both operands contract over C on sublanes -> MXU-native, no vxpose.
    s = lax.dot_general(
        k, q,
        dimension_numbers=(((1,), (1,)), ((0,), (0,))),
        preferred_element_type=jnp.float32)

    m_prev = m_ref[...]
    m_new = jnp.maximum(m_prev, jnp.max(s, axis=1, keepdims=True))  # [Hb,1,Tq]
    alpha = jnp.exp(m_prev - m_new)                                 # [Hb,1,Tq] f32
    # bf16 exp on v6e/v7x when the model dtype is bf16 (halves EUP cost,
    # already the PV-matmul dtype); f32 exp otherwise (and always on v5e).
    p = jnp.exp((s - m_new).astype(exp_dtype))                      # [Hb,Tk,Tq]

    l_ref[...] = alpha * l_ref[...] + jnp.sum(p, axis=1, keepdims=True,
                                              dtype=jnp.float32)
    m_ref[...] = m_new

    p_mm = p if p.dtype == mxu_dtype else p.astype(mxu_dtype)
    # pv[h, c, t] = sum_s v[h, c, s] * p[h, s, t]  ->  [Hb, C, Tq].
    # lhs contracts on lanes, rhs on sublanes -> canonical (M,K)x(K,N).
    pv = lax.dot_general(
        v, p_mm,
        dimension_numbers=(((2,), (1,)), ((0,), (0,))),
        preferred_element_type=jnp.float32)
    acc_ref[...] = alpha * acc_ref[...] + pv

    @pl.when(kv == pl.num_programs(3) - 1)
    def _():
        # approx (EUP) reciprocal only for bf16 outputs; exact for f32.
        inv_l = pl.reciprocal(l_ref[...], approx=recip_approx)
        o_ref[...] = (acc_ref[...] * inv_l).astype(o_ref.dtype)


# --------------------------------------------------------------------------- #
# Generation-aware planning
# --------------------------------------------------------------------------- #
def _device_kind():
    try:
        return jax.devices()[0].device_kind.lower()
    except Exception:
        return ""


def _vmem_plan():
    """Returns (vmem_limit_bytes, planner_budget_bytes, device_kind)."""
    kind = _device_kind()
    try:
        cap = int(pltpu.get_tpu_info().vmem_capacity_bytes)
    except Exception:
        cap = (64 << 20) if "v7" in kind else (128 << 20)
    # v7x (64 MiB):  limit 48 MiB, planner ~36 MiB.
    # v5e/v6e (128): limit 100 MiB, planner ~75 MiB.
    vmem_limit = min(cap - (16 << 20), 100 << 20)
    planner_budget = (vmem_limit * 3) // 4   # headroom for compiler scratch etc.
    return vmem_limit, planner_budget, kind


def _divisors_desc(n):
    return [d for d in range(n, 0, -1) if n % d == 0]


def _plan_tiles(bs, n_heads, ch, t, in_itemsize, mxu_itemsize, *,
                planner_budget, is_v7):
    """Pick (head_block, query_tile, kv_tile) under the VMEM budget."""
    # Query tile: caps the f32 [Tk, Tq] intermediates and adds a parallel axis.
    tq = t
    if t > 1024:
        for cand in (1024, 512, 256, 128):
            if t % cand == 0:
                tq = cand
                break
        # TODO(synk): T not divisible by 128 falls back to a single query tile.

    # KV tile: generation-aware cap; keep per-row DMA runs >= ~1 KiB.
    kv_cap = 512 if is_v7 else 1024
    min_run = max(128, 1024 // in_itemsize)
    if t <= kv_cap:
        tk_cands = [t]
    else:
        tk_cands = [c for c in (1024, 512, 256, 128)
                    if c <= kv_cap and t % c == 0 and c >= min_run]
        if not tk_cands:
            tk_cands = [c for c in (1024, 512, 256, 128)
                        if c <= kv_cap and t % c == 0]
        if not tk_cands:
            tk_cands = [t]   # TODO(synk): ragged T falls back to one KV tile.

    def footprint(hb, tk):
        dbl = 2                                                  # double-buffer
        io = in_itemsize * dbl * hb * ch * (2 * tq + 2 * tk)     # q, o, k, v
        scr = 4 * hb * (ch * tq + 2 * tq)                        # acc, m, l (f32)
        scr += mxu_itemsize * hb * ch * tq                       # scaled-Q cache
        inter = 4 * hb * tk * tq                                 # s (f32)
        inter += 4 * hb * tk * tq                                # p (<= f32)
        inter += mxu_itemsize * hb * tk * tq                     # p MXU copy
        inter += 2 * mxu_itemsize * hb * ch * tk                 # k/v cast temps
        return io + scr + inter

    for tk in tk_cands:
        for hb in _divisors_desc(n_heads):
            if footprint(hb, tk) <= planner_budget:
                if is_v7:
                    # Both v7x TensorCores need parallel grid cells.
                    while hb > 1 and bs * (n_heads // hb) * (t // tq) < 2:
                        hb = max(d for d in _divisors_desc(n_heads) if d < hb)
                return hb, tq, tk
    return 1, tq, tk_cands[-1]


# --------------------------------------------------------------------------- #
# Wrapper
# --------------------------------------------------------------------------- #
def qkv_attention(qkv: jax.Array, n_heads: int, *, mxu_bf16: bool = True) -> jax.Array:
    """qkv: [N, 3*H*C, T] -> [N, H*C, T]  (matches QKVAttention.forward)."""
    bs, width, length = qkv.shape
    assert width % (3 * n_heads) == 0
    ch = width // (3 * n_heads)
    scale2 = 1.0 / math.sqrt(ch)            # (ch ** -0.25) ** 2

    # chunk(3, dim=1) + per-head split as a free reshape: [N, 3, H, C, T].
    qkv5 = qkv.reshape(bs, 3, n_heads, ch, length)

    vmem_limit, planner_budget, kind = _vmem_plan()
    is_v7 = "v7" in kind
    is_v5 = "v5" in kind

    in_dtype = qkv.dtype
    mxu_dtype = jnp.bfloat16 if (mxu_bf16 and in_dtype == jnp.float32) else in_dtype
    mxu_itemsize = 2 if mxu_dtype == jnp.bfloat16 else in_dtype.itemsize
    # bf16 exp only when the model dtype is bf16 and the chip has a bf16 EUP.
    exp_dtype = jnp.bfloat16 if (in_dtype == jnp.bfloat16 and not is_v5) else jnp.float32
    recip_approx = bool(in_dtype != jnp.float32)

    hb, tq, tk = _plan_tiles(bs, n_heads, ch, length,
                             in_dtype.itemsize, mxu_itemsize,
                             planner_budget=planner_budget, is_v7=is_v7)

    grid = (bs, n_heads // hb, length // tq, length // tk)   # KV axis last

    q_spec = pl.BlockSpec((None, None, hb, ch, tq),
                          lambda n, h, qi, kv: (n, 0, h, 0, qi))
    k_spec = pl.BlockSpec((None, None, hb, ch, tk),
                          lambda n, h, qi, kv: (n, 1, h, 0, kv))
    v_spec = pl.BlockSpec((None, None, hb, ch, tk),
                          lambda n, h, qi, kv: (n, 2, h, 0, kv))
    o_spec = pl.BlockSpec((None, hb, ch, tq),
                          lambda n, h, qi, kv: (n, h, 0, qi))

    kernel = functools.partial(_qkv_attn_kernel, scale2=scale2,
                               mxu_dtype=mxu_dtype, exp_dtype=exp_dtype,
                               recip_approx=recip_approx)

    out = pl.pallas_call(
        kernel,
        out_shape=jax.ShapeDtypeStruct((bs, n_heads, ch, length), qkv.dtype),
        grid_spec=pltpu.PrefetchScalarGridSpec(
            num_scalar_prefetch=0,
            grid=grid,
            in_specs=[q_spec, k_spec, v_spec],
            out_specs=o_spec,
            scratch_shapes=[
                pltpu.VMEM((hb, ch, tq), mxu_dtype),     # scaled/cast Q cache
                pltpu.VMEM((hb, 1, tq), jnp.float32),    # running max m
                pltpu.VMEM((hb, 1, tq), jnp.float32),    # running denom l
                pltpu.VMEM((hb, ch, tq), jnp.float32),   # running numerator
            ]),
        compiler_params=pltpu.CompilerParams(
            dimension_semantics=("parallel", "parallel", "parallel", "arbitrary"),
            vmem_limit_bytes=vmem_limit),
    )(qkv5, qkv5, qkv5)   # same array; each spec DMAs only its own q/k/v block

    return out.reshape(bs, n_heads * ch, length)


# --------------------------------------------------------------------------- #
# Reference + self-test
# --------------------------------------------------------------------------- #
def _reference(qkv, n_heads):
    bs, width, length = qkv.shape
    ch = width // (3 * n_heads)
    hc = n_heads * ch
    q = qkv[:, 0 * hc:1 * hc, :].reshape(bs * n_heads, ch, length)
    k = qkv[:, 1 * hc:2 * hc, :].reshape(bs * n_heads, ch, length)
    v = qkv[:, 2 * hc:3 * hc, :].reshape(bs * n_heads, ch, length)
    scale = 1.0 / math.sqrt(math.sqrt(ch))
    w = jnp.einsum('bct,bcs->bts',
                   (q * scale).astype(jnp.float32),
                   (k * scale).astype(jnp.float32),
                   precision=lax.Precision.HIGHEST)
    w = jax.nn.softmax(w, axis=-1).astype(qkv.dtype)
    a = jnp.einsum('bts,bcs->bct',
                   w.astype(jnp.float32), v.astype(jnp.float32),
                   precision=lax.Precision.HIGHEST)
    return a.reshape(bs, -1, length).astype(qkv.dtype)


def _check(out, ref, atol, rtol, name):
    assert out.shape == ref.shape, (name, out.shape, ref.shape)
    ok = jnp.allclose(out.astype(jnp.float32), ref.astype(jnp.float32),
                      atol=atol, rtol=rtol)
    assert bool(ok), f"mismatch ({name})"


if __name__ == "__main__":
    key = jax.random.PRNGKey(0)
    k1, k2, k3 = jax.random.split(key, 3)

    # 1) Small f32 case, strict-precision path (f32 MXU operands).
    N, H, C, T = 2, 2, 8, 16
    qkv_small = jax.random.normal(k1, (N, 3 * H * C, T), dtype=jnp.float32)
    out = jax.block_until_ready(qkv_attention(qkv_small, n_heads=H, mxu_bf16=False))
    _check(out, _reference(qkv_small, H), 1e-2, 1e-2, "small-f32-strict")

    # 2) Same case, default fast path (bf16 MXU operands, f32 accumulation).
    out = jax.block_until_ready(qkv_attention(qkv_small, n_heads=H))
    _check(out, _reference(qkv_small, H), 1e-2, 1e-2, "small-f32-bf16mxu")

    # 3) Multi Q-tile + multi KV-tile case (T=2048) exercising the online
    #    softmax accumulation and the new query-tile grid axis.
    N2, H2, C2, T2 = 1, 2, 16, 2048
    qkv_big = jax.random.normal(k2, (N2, 3 * H2 * C2, T2), dtype=jnp.float32)
    out2 = jax.block_until_ready(qkv_attention(qkv_big, n_heads=H2))
    _check(out2, _reference(qkv_big, H2), 1e-2, 1e-2, "tiled-f32")

    # 4) bf16 inputs: exercises the bf16 MXU + (v6e/v7x) bf16-exp path.
    N3, H3, C3, T3 = 1, 2, 16, 256
    qkv_bf16 = jax.random.normal(k3, (N3, 3 * H3 * C3, T3),
                                 dtype=jnp.float32).astype(jnp.bfloat16)
    out3 = jax.block_until_ready(qkv_attention(qkv_bf16, n_heads=H3))
    _check(out3, _reference(qkv_bf16, H3), 2e-2, 2e-2, "bf16")

    print("KERNEL_OK")
</pallas_src>

<mosaic_0001>
module attributes {stable_mosaic.version = 11 : i64} {
  func.func @_qkv_attn_kernel(%arg0: i32, %arg1: i32, %arg2: i32, %arg3: i32, %arg4: memref<1x1x2x8x16xf32, #tpu.memory_space<vmem>>, %arg5: memref<1x1x2x8x16xf32, #tpu.memory_space<vmem>>, %arg6: memref<1x1x2x8x16xf32, #tpu.memory_space<vmem>>, %arg7: memref<1x2x8x16xf32, #tpu.memory_space<vmem>>, %arg8: memref<2x8x16xf32, #tpu.memory_space<vmem>>, %arg9: memref<2x1x16xf32, #tpu.memory_space<vmem>>, %arg10: memref<2x1x16xf32, #tpu.memory_space<vmem>>, %arg11: memref<2x8x16xf32, #tpu.memory_space<vmem>>) attributes {dimension_semantics = [#tpu.dimension_semantics<parallel>, #tpu.dimension_semantics<parallel>, #tpu.dimension_semantics<parallel>, #tpu.dimension_semantics<arbitrary>], iteration_bounds = array<i64: 2, 1, 1, 1>, scalar_prefetch = 0 : i64, scratch_operands = 4 : i64, tpu.core_type = #tpu.core_type<tc>, window_params = [{transform_indices = @transform_0, window_bounds = array<i64: 1, 1, 2, 8, 16>}, {transform_indices = @transform_1, window_bounds = array<i64: 1, 1, 2, 8, 16>}, {transform_indices = @transform_2, window_bounds = array<i64: 1, 1, 2, 8, 16>}, {transform_indices = @transform_3, window_bounds = array<i64: 1, 2, 8, 16>}]} {
    %c0_i32 = arith.constant 0 : i32
    %0 = arith.cmpi eq, %arg3, %c0_i32 : i32
    %1 = arith.extui %0 : i1 to i32
    %c0_i32_0 = arith.constant 0 : i32
    %2 = arith.cmpi ne, %1, %c0_i32_0 : i32
    scf.if %2 {
      %c0_36 = arith.constant 0 : index
      %c0_37 = arith.constant 0 : index
      %c0_38 = arith.constant 0 : index
      %c0_39 = arith.constant 0 : index
      %c0_40 = arith.constant 0 : index
      %34 = vector.load %arg4[%c0_36, %c0_37, %c0_38, %c0_39, %c0_40] : memref<1x1x2x8x16xf32, #tpu.memory_space<vmem>>, vector<1x1x2x8x16xf32>
      %35 = vector.shape_cast %34 : vector<1x1x2x8x16xf32> to vector<2x8x16xf32>
      %cst_41 = arith.constant 0.353553385 : f32
      %36 = vector.broadcast %cst_41 : f32 to vector<2x8x16xf32>
      %37 = arith.mulf %35, %36 : vector<2x8x16xf32>
      %c0_42 = arith.constant 0 : index
      %c0_43 = arith.constant 0 : index
      %c0_44 = arith.constant 0 : index
      %38 = vector.load %arg8[%c0_42, %c0_43, %c0_44] : memref<2x8x16xf32, #tpu.memory_space<vmem>>, vector<2x8x16xf32>
      tpu.vector_store %arg8[%c0_42, %c0_43, %c0_44], %37 {strides = array<i32>} : memref<2x8x16xf32, #tpu.memory_space<vmem>>, vector<2x8x16xf32>,
      %cst_45 = arith.constant 0xFF800000 : f32
      %39 = vector.broadcast %cst_45 : f32 to vector<2x1x16xf32>
      %c0_46 = arith.constant 0 : index
      %c0_47 = arith.constant 0 : index
      %c0_48 = arith.constant 0 : index
      %40 = vector.load %arg9[%c0_46, %c0_47, %c0_48] : memref<2x1x16xf32, #tpu.memory_space<vmem>>, vector<2x1x16xf32>
      tpu.vector_store %arg9[%c0_46, %c0_47, %c0_48], %39 {strides = array<i32>} : memref<2x1x16xf32, #tpu.memory_space<vmem>>, vector<2x1x16xf32>,
      %cst_49 = arith.constant 0.000000e+00 : f32
      %41 = vector.broadcast %cst_49 : f32 to vector<2x1x16xf32>
      %c0_50 = arith.constant 0 : index
      %c0_51 = arith.constant 0 : index
      %c0_52 = arith.constant 0 : index
      %42 = vector.load %arg10[%c0_50, %c0_51, %c0_52] : memref<2x1x16xf32, #tpu.memory_space<vmem>>, vector<2x1x16xf32>
      tpu.vector_store %arg10[%c0_50, %c0_51, %c0_52], %41 {strides = array<i32>} : memref<2x1x16xf32, #tpu.memory_space<vmem>>, vector<2x1x16xf32>,
      %cst_53 = arith.constant 0.000000e+00 : f32
      %43 = vector.broadcast %cst_53 : f32 to vector<2x8x16xf32>
      %c0_54 = arith.constant 0 : index
      %c0_55 = arith.constant 0 : index
      %c0_56 = arith.constant 0 : index
      %44 = vector.load %arg11[%c0_54, %c0_55, %c0_56] : memref<2x8x16xf32, #tpu.memory_space<vmem>>, vector<2x8x16xf32>
      tpu.vector_store %arg11[%c0_54, %c0_55, %c0_56], %43 {strides = array<i32>} : memref<2x8x16xf32, #tpu.memory_space<vmem>>, vector<2x8x16xf32>,
    } else {
    }
    %c0 = arith.constant 0 : index
    %c0_1 = arith.constant 0 : index
    %c0_2 = arith.constant 0 : index
    %3 = vector.load %arg8[%c0, %c0_1, %c0_2] : memref<2x8x16xf32, #tpu.memory_space<vmem>>, vector<2x8x16xf32>
    %c0_3 = arith.constant 0 : index
    %c0_4 = arith.constant 0 : index
    %c0_5 = arith.constant 0 : index
    %c0_6 = arith.constant 0 : index
    %c0_7 = arith.constant 0 : index
    %4 = vector.load %arg5[%c0_3, %c0_4, %c0_5, %c0_6, %c0_7] : memref<1x1x2x8x16xf32, #tpu.memory_space<vmem>>, vector<1x1x2x8x16xf32>
    %5 = vector.shape_cast %4 : vector<1x1x2x8x16xf32> to vector<2x8x16xf32>
    %c0_8 = arith.constant 0 : index
    %c0_9 = arith.constant 0 : index
    %c0_10 = arith.constant 0 : index
    %c0_11 = arith.constant 0 : index
    %c0_12 = arith.constant 0 : index
    %6 = vector.load %arg6[%c0_8, %c0_9, %c0_10, %c0_11, %c0_12] : memref<1x1x2x8x16xf32, #tpu.memory_space<vmem>>, vector<1x1x2x8x16xf32>
    %7 = vector.shape_cast %6 : vector<1x1x2x8x16xf32> to vector<2x8x16xf32>
    %cst = arith.constant dense<0.000000e+00> : vector<2x16x16xf32>
    %8 = tpu.matmul %5, %3, %cst {dimension_numbers = #tpu.dot_dimension_numbers<[1], [1], [2], [2], [0, 0, 0, 2, 1, 2], [0], [0]>} : vector<2x8x16xf32>, vector<2x8x16xf32>, vector<2x16x16xf32> -> vector<2x16x16xf32>
    %c0_13 = arith.constant 0 : index
    %c0_14 = arith.constant 0 : index
    %c0_15 = arith.constant 0 : index
    %9 = vector.load %arg9[%c0_13, %c0_14, %c0_15] : memref<2x1x16xf32, #tpu.memory_space<vmem>>, vector<2x1x16xf32>
    %cst_16 = arith.constant dense<0xFF800000> : vector<2x16xf32>
    %10 = vector.multi_reduction <maximumf>, %8, %cst_16 [1] : vector<2x16x16xf32> to vector<2x16xf32>
    %11 = vector.shape_cast %10 : vector<2x16xf32> to vector<2x1x16xf32>
    %12 = arith.maximumf %9, %11 : vector<2x1x16xf32>
    %13 = arith.subf %9, %12 : vector<2x1x16xf32>
    %14 = math.exp %13 : vector<2x1x16xf32>
    %15 = vector.broadcast %12 : vector<2x1x16xf32> to vector<2x16x16xf32>
    %16 = arith.subf %8, %15 : vector<2x16x16xf32>
    %17 = math.exp %16 : vector<2x16x16xf32>
    %c0_17 = arith.constant 0 : index
    %c0_18 = arith.constant 0 : index
    %c0_19 = arith.constant 0 : index
    %18 = vector.load %arg10[%c0_17, %c0_18, %c0_19] : memref<2x1x16xf32, #tpu.memory_space<vmem>>, vector<2x1x16xf32>
    %19 = arith.mulf %14, %18 : vector<2x1x16xf32>
    %cst_20 = arith.constant dense<0.000000e+00> : vector<2x16xf32>
    %20 = vector.multi_reduction <add>, %17, %cst_20 [1] : vector<2x16x16xf32> to vector<2x16xf32>
    %21 = vector.shape_cast %20 : vector<2x16xf32> to vector<2x1x16xf32>
    %22 = arith.addf %19, %21 : vector<2x1x16xf32>
    %c0_21 = arith.constant 0 : index
    %c0_22 = arith.constant 0 : index
    %c0_23 = arith.constant 0 : index
    %23 = vector.load %arg10[%c0_21, %c0_22, %c0_23] : memref<2x1x16xf32, #tpu.memory_space<vmem>>, vector<2x1x16xf32>
    tpu.vector_store %arg10[%c0_21, %c0_22, %c0_23], %22 {strides = array<i32>} : memref<2x1x16xf32, #tpu.memory_space<vmem>>, vector<2x1x16xf32>,
    %c0_24 = arith.constant 0 : index
    %c0_25 = arith.constant 0 : index
    %c0_26 = arith.constant 0 : index
    %24 = vector.load %arg9[%c0_24, %c0_25, %c0_26] : memref<2x1x16xf32, #tpu.memory_space<vmem>>, vector<2x1x16xf32>
    tpu.vector_store %arg9[%c0_24, %c0_25, %c0_26], %12 {strides = array<i32>} : memref<2x1x16xf32, #tpu.memory_space<vmem>>, vector<2x1x16xf32>,
    %cst_27 = arith.constant dense<0.000000e+00> : vector<2x8x16xf32>
    %25 = tpu.matmul %7, %17, %cst_27 {dimension_numbers = #tpu.dot_dimension_numbers<[2], [1], [1], [2], [0, 0, 0, 1, 1, 2], [0], [0]>} : vector<2x8x16xf32>, vector<2x16x16xf32>, vector<2x8x16xf32> -> vector<2x8x16xf32>
    %c0_28 = arith.constant 0 : index
    %c0_29 = arith.constant 0 : index
    %c0_30 = arith.constant 0 : index
    %26 = vector.load %arg11[%c0_28, %c0_29, %c0_30] : memref<2x8x16xf32, #tpu.memory_space<vmem>>, vector<2x8x16xf32>
    %27 = vector.broadcast %14 : vector<2x1x16xf32> to vector<2x8x16xf32>
    %28 = arith.mulf %27, %26 : vector<2x8x16xf32>
    %29 = arith.addf %28, %25 : vector<2x8x16xf32>
    %c0_31 = arith.constant 0 : index
    %c0_32 = arith.constant 0 : index
    %c0_33 = arith.constant 0 : index
    %30 = vector.load %arg11[%c0_31, %c0_32, %c0_33] : memref<2x8x16xf32, #tpu.memory_space<vmem>>, vector<2x8x16xf32>
    tpu.vector_store %arg11[%c0_31, %c0_32, %c0_33], %29 {strides = array<i32>} : memref<2x8x16xf32, #tpu.memory_space<vmem>>, vector<2x8x16xf32>,
    %c0_i32_34 = arith.constant 0 : i32
    %31 = arith.cmpi eq, %arg3, %c0_i32_34 : i32
    %32 = arith.extui %31 : i1 to i32
    %c0_i32_35 = arith.constant 0 : i32
    %33 = arith.cmpi ne, %32, %c0_i32_35 : i32
    scf.if %33 {
      %c0_36 = arith.constant 0 : index
      %c0_37 = arith.constant 0 : index
      %c0_38 = arith.constant 0 : index
      %34 = vector.load %arg10[%c0_36, %c0_37, %c0_38] : memref<2x1x16xf32, #tpu.memory_space<vmem>>, vector<2x1x16xf32>
      %35 = tpu.reciprocal %34 : vector<2x1x16xf32> -> vector<2x1x16xf32>
      %c0_39 = arith.constant 0 : index
      %c0_40 = arith.constant 0 : index
      %c0_41 = arith.constant 0 : index
      %36 = vector.load %arg11[%c0_39, %c0_40, %c0_41] : memref<2x8x16xf32, #tpu.memory_space<vmem>>, vector<2x8x16xf32>
      %37 = vector.broadcast %35 : vector<2x1x16xf32> to vector<2x8x16xf32>
      %38 = arith.mulf %36, %37 : vector<2x8x16xf32>
      %c0_42 = arith.constant 0 : index
      %c0_43 = arith.constant 0 : index
      %c0_44 = arith.constant 0 : index
      %c0_45 = arith.constant 0 : index
      %39 = vector.load %arg7[%c0_42, %c0_43, %c0_44, %c0_45] : memref<1x2x8x16xf32, #tpu.memory_space<vmem>>, vector<1x2x8x16xf32>
      %40 = vector.shape_cast %39 : vector<1x2x8x16xf32> to vector<2x8x16xf32>
      %41 = vector.shape_cast %38 : vector<2x8x16xf32> to vector<1x2x8x16xf32>
      tpu.vector_store %arg7[%c0_42, %c0_43, %c0_44, %c0_45], %41 {strides = array<i32>} : memref<1x2x8x16xf32, #tpu.memory_space<vmem>>, vector<1x2x8x16xf32>,
    } else {
    }
    return
  }
  func.func @transform_0(%arg0: i32, %arg1: i32, %arg2: i32, %arg3: i32) -> (i32, i32, i32, i32, i32) {
    %c0_i32 = arith.constant 0 : i32
    %c0_i32_0 = arith.constant 0 : i32
    %c0_i32_1 = arith.constant 0 : i32
    return %arg0, %c0_i32, %arg1, %c0_i32_0, %arg2 : i32, i32, i32, i32, i32
  }
  func.func @transform_1(%arg0: i32, %arg1: i32, %arg2: i32, %arg3: i32) -> (i32, i32, i32, i32, i32) {
    %c1_i32 = arith.constant 1 : i32
    %c0_i32 = arith.constant 0 : i32
    %c0_i32_0 = arith.constant 0 : i32
    return %arg0, %c1_i32, %arg1, %c0_i32, %arg3 : i32, i32, i32, i32, i32
  }
  func.func @transform_2(%arg0: i32, %arg1: i32, %arg2: i32, %arg3: i32) -> (i32, i32, i32, i32, i32) {
    %c2_i32 = arith.constant 2 : i32
    %c0_i32 = arith.constant 0 : i32
    %c0_i32_0 = arith.constant 0 : i32
    return %arg0, %c2_i32, %arg1, %c0_i32, %arg3 : i32, i32, i32, i32, i32
  }
  func.func @transform_3(%arg0: i32, %arg1: i32, %arg2: i32, %arg3: i32) -> (i32, i32, i32, i32) {
    %c0_i32 = arith.constant 0 : i32
    %c0_i32_0 = arith.constant 0 : i32
    return %arg0, %arg1, %c0_i32, %arg2 : i32, i32, i32, i32
  }
}

</mosaic_0001>

<bundles_post_ra>
// kernel: tpu_custom_call.1
= control target key start
LH: loop header
LB: loop body
LE: loop exit
PB: predicated region body
PF: predicated region fallthrough
CT: control target
= control target key end

     0   :  { %s1704_s0 = inlined_call_operand.hbm [shape: f32[2,3,2,8,16], index: 0, kind: input, shape index: {}]   ;;  %s1705_s1 = inlined_call_operand.hbm [shape: f32[2,3,2,8,16], index: 1, kind: input, shape index: {}]   ;;  %s1706_s2 = inlined_call_operand.hbm [shape: f32[2,3,2,8,16], index: 2, kind: input, shape index: {}]   ;;  %s1707_s3 = inlined_call_operand.hbm [shape: f32[2,2,8,16], index: 3, kind: output, shape index: {}]  }
   0x1   :  { %1717 = sst [smem:[#allocation18_spill]] %s1704_s0 }
   0x2   :  { %1718 = sst [smem:[#allocation19_spill]] %s1705_s1 }
   0x3   :  { %8 = vsyncpa [#allocation7], 0 }
   0x4   :  { %10 = vsyncpa [#allocation7 + $0x1], 0 }
   0x5   :  { %11 = vsyncpa [#allocation10], 0 }
   0x6   :  { %13 = vsyncpa [#allocation10 + $0x1], 0 }
   0x7   :  { %14 = vsyncpa [#allocation8], 0 }
   0x8   :  { %16 = vsyncpa [#allocation8 + $0x1], 0  ;;  %s1390_s12 = smov 0   ;;  %s1392_s13 = smov 0  }
   0x9   :  { %s1394_s14 = smov 0   ;;  %s1396_s15 = smov 0  }
   0xa   :  { %s1398_s16 = smov 0   ;;  %s1400_s17 = smov 0  }
   0xb LB: > { %1719 = sst [smem:[#allocation16_spill]] %s1352_s16  ;;  %s1421_s18 = sadd.s32 4294967295, %s1356_s17   ;;  %s1356_s17 = sphi %s1400_s17, %s22_s17   ;;  %s1352_s16 = sphi %s1398_s16, %s1740_s16   ;;  %s1348_s15 = sphi %s1396_s15, %s1739_s15   ;;  %s1344_s14 = sphi %s1394_s14, %s1743_s14   ;;  %s1340_s13 = sphi %s1392_s13, %s1742_s13   ;;  %s1336_s12 = sphi %s1390_s12, %s1741_s12  }
   0xc   : > { %s1013_s19 = sadd.s32 4294967294, %s1356_s17   ;;  %s48_s20 = sadd.s32 1, %s1352_s16 }
   0xd   : > { %s59_s21 = sadd.s32 1, %s1344_s14  ;;  %p50_p0 = scmp.ge.s32.totalorder %s48_s20, 2 }
   0xe   : > { %p66_p1 = scmp.ne.s32.totalorder %s1344_s14, %s1340_s13  ;;  %p67_p2 = scmp.eq.s32.totalorder %s1356_s17, 0 }
   0xf   : > { %p72_p3 = scmp.ne.s32.totalorder %s1340_s13, %s1336_s12  ;;  %s1745_s20 = smov (%p50_p0, %s48_s20), 0 }
  0x10   : > { %1720 = sst [smem:[#allocation17_spill]] %s1745_s20  ;;  %p1433_p4 = por %p67_p2, %p66_p1 }
  0x11   : > { %p73_p5 = scmp.eq.s32.totalorder %s1421_s18, 0  ;;  %s52_s23 = ssub.s32 %s1352_s16, %s1745_s20 }
  0x12   : > { %p160_p6 = scmp.eq.s32.totalorder %s1421_s18, 1  ;;  %p57_p7 = scmp.eq.s32.totalorder %s52_s23, 0 }
  0x13   : > { %p1441_p8 = por %p73_p5, %p72_p3  ;;  %p166_p10 = scmp.eq.s32.totalorder %s1013_s19, 1 }
  0x14   : > { %p1445_p9 = por %p160_p6, %p66_p1  ;;  %p1104_p13 = scmp.lt.s32.totalorder %s1356_s17, 2 }
  0x15   : > { %s1722_s24 = scalar_select %p1441_p8, 1, 0 }
  0x16   : > { %s1723_s25 = scalar_select %p1445_p9, 1, 0 }
  0x17   : > { %s1450_s26 = scalar_select %p57_p7, %s1344_s14, %s59_s21  }
  0x18   : > { %p1452_p11 = por %p166_p10, %p72_p3  ;;  %s1708_s28 = sand.u32 1, %s1344_s14  }
  0x19   : > { %s1461_s29 = sshll.u32 %s1708_s28, 4  ;;  %s1464_s30 = smul.u32 768, %s1352_s16 }
  0x1a   : > { %s1724_s27 = scalar_select %p1452_p11, 1, 0 }
  0x1b   : > { %p1468_p0 = pnand %p1104_p13, %p1433_p4  ;;  %s210_s5 = sand.u32 1, %s1356_s17  }
  0x1c   : > { %s1726_s1 = sld [smem:[#allocation19_spill]]  ;;  %s214_s10 = scalar_lea.vmem [#allocation9], %s1461_s29 }
  0x1d   : > { %s225_s11 = sshll.u32 %s214_s10, 4  ;;  %s1483_s19 = scalar_lea.sflag [#allocation10], %s210_s5  ;;  %s1480_s11 = int_to_ptr.vmem [resolvable:$true] %s225_s11 }
  0x1e   : > { %p1488_p3 = pneg %p1468_p0 }
  0x22   : > { %s911_s8 = scalar_lea.hbm %s1726_s1, %s1464_s30  ;;  %s1183_s7 = scalar_lea.hbm %s1726_s1, 1536 }
  0x23   : > { %s1477_s9 = scalar_lea.hbm %s911_s8, 256  ;;  %s1208_s21 = scalar_lea.hbm %s911_s8, 512 }
  0x24   : > { %p1179_p2 = scmp.ne.s32.totalorder %s1477_s9, %s1208_s21  ;;  %p1184_p6 = scmp.lt.u32.totalorder %s1477_s9, %s1726_s1 }
  0x25   : > { %p1185_p7 = scmp.lt.u32.totalorder %s1183_s7, %s1208_s21  ;;  %p1187_p13 = scmp.lt.u32.totalorder %s1208_s21, %s1477_s9 }
  0x26   : > { %p1181_p4 = pnand %p1488_p3, %p1179_p2 }
  0x27   : > { %p1186_p10 = por %p1185_p7, %p1184_p6 }
  0x28   : > { %p1182_p5 = pneg %p1181_p4 }
  0x29   : > { %p1188_p12 = por %p1187_p13, %p1186_p10 }
  0x2b   : > { %p1189_p1 = pnand %p1188_p12, %p1182_p5 }
  0x2d   : > { %1192 = shalt.err (!%p1189_p1)
}
  0x2e   : > { %s1193_s5 = scalar_lea.vmem %s1480_s11, 256  ;;  %s1358_s8 = smov [#allocation9]  }
  0x2f   : > { %p1194_p2 = scmp.ne.s32.totalorder %s1480_s11, %s1193_s5  ;;  %s1198_s23 = sshll.u32 %s1358_s8, 4  ;;  %s1199_s23 = int_to_ptr.vmem [resolvable:$false] %s1198_s23 }
  0x30   : > { %s1200_s28 = scalar_lea.vmem %s1199_s23, 512  ;;  %p1201_p9 = scmp.lt.s32.totalorder %s1480_s11, %s1199_s23 }
  0x31   : > { %p1196_p4 = pnand %p1194_p2, %p1488_p3  ;;  %p1202_p8 = scmp.lt.s32.totalorder %s1200_s28, %s1193_s5 }
  0x33   : > { %p1197_p11 = pneg %p1196_p4  ;;  %p1203_p6 = por %p1202_p8, %p1201_p9 }
  0x35   : > { %p1204_p7 = pnand %p1203_p6, %p1197_p11 }
  0x37   : > { %1207 = shalt.err (!%p1204_p7)
}
  0x38   : > { %s1711_s21 = smov 128   ;;  %s1713_s6 = smov 8  }
  0x39   : > { %1096 = dma.hbm_to_vmem [thread:$0]  (!%p1468_p0), %s1477_s9, 256, %s1480_s11, %s1483_s19, %s1711_s21, %s1711_s21, %s1713_s6  }
  0x3a   : > { %p258_p8 = scmp.lt.s32.totalorder %s1356_s17, 3  ;;  %p1728_p9 = scmp.ge.s32.totalorder %s1356_s17, 1 }
  0x3b   : > { %s1730_s0 = sld [smem:[#allocation18_spill]]  ;;  %s190_s23 = scalar_lea.vmem [#allocation6], %s1461_s29 }
  0x3c   : > { %p1518_p11 = pnand %p1728_p9, %p258_p8  ;;  %s200_s28 = sshll.u32 %s190_s23, 4  ;;  %s1529_s28 = int_to_ptr.vmem [resolvable:$true] %s200_s28 }
  0x3d   : > { %s1731_s9 = sand.u32 1, %s1344_s14  }
  0x3e   : > { %s1729_s7 = scalar_select %p1518_p11, 1, 0 }
  0x3f   : > { %s1533_s11 = scalar_lea.sflag [#allocation7], %s1731_s9 }
  0x41   : > { %s1526_s8 = scalar_lea.hbm %s1730_s0, %s1464_s30  ;;  %s1214_s5 = scalar_lea.hbm %s1730_s0, 1536 }
  0x42   : > { %s1209_s21 = scalar_lea.hbm %s1526_s8, 256  ;;  %p1215_p10 = scmp.lt.u32.totalorder %s1526_s8, %s1730_s0 }
  0x43   : > { %p1210_p12 = scmp.ne.s32.totalorder %s1526_s8, %s1209_s21  ;;  %p1216_p13 = scmp.lt.u32.totalorder %s1214_s5, %s1209_s21 }
  0x44   : > { %p1218_p4 = scmp.lt.u32.totalorder %s1209_s21, %s1526_s8 }
  0x45   : > { %p1212_p1 = pnand %p1210_p12, %p1488_p3  ;;  %p1217_p2 = por %p1216_p13, %p1215_p10 }
  0x47   : > { %p1213_p5 = pneg %p1212_p1  ;;  %p1219_p6 = por %p1218_p4, %p1217_p2 }
  0x49   : > { %p1220_p7 = pnand %p1219_p6, %p1213_p5 }
  0x4b   : > { %1223 = shalt.err (!%p1220_p7)
}
  0x4c   : > { %s1224_s23 = scalar_lea.vmem %s1529_s28, 256  ;;  %s1361_s6 = smov [#allocation6]  }
  0x4d   : > { %p1225_p8 = scmp.ne.s32.totalorder %s1529_s28, %s1224_s23  ;;  %s1229_s9 = sshll.u32 %s1361_s6, 4  ;;  %s1230_s9 = int_to_ptr.vmem [resolvable:$false] %s1229_s9 }
  0x4e   : > { %s1231_s1 = scalar_lea.vmem %s1230_s9, 512  ;;  %p1232_p1 = scmp.lt.s32.totalorder %s1529_s28, %s1230_s9 }
  0x4f   : > { %p1227_p9 = pnand %p1225_p8, %p1488_p3  ;;  %p1233_p11 = scmp.lt.s32.totalorder %s1231_s1, %s1224_s23 }
  0x51   : > { %p1228_p12 = pneg %p1227_p9  ;;  %p1234_p10 = por %p1233_p11, %p1232_p1 }
  0x53   : > { %p1235_p13 = pnand %p1234_p10, %p1228_p12 }
  0x55   : > { %1238 = shalt.err (!%p1235_p13)
}
  0x56   : > { %s1732_s20 = smov 8   ;;  %s1733_s21 = smov 128  }
  0x57   : > { %1093 = dma.hbm_to_vmem [thread:$0]  (!%p1468_p0), %s1526_s8, 256, %s1529_s28, %s1533_s11, %s1733_s21, %s1733_s21, %s1732_s20  }
  0x58   : > { %s921_s6 = scalar_lea.hbm %s1706_s2, %s1464_s30  ;;  %s239_s23 = scalar_lea.vmem [#allocation11], %s1461_s29 }
  0x59   : > { %s250_s9 = sshll.u32 %s239_s23, 4  ;;  %s1565_s1 = scalar_lea.hbm %s921_s6, 512  ;;  %s1567_s9 = int_to_ptr.vmem [resolvable:$true] %s250_s9 }
  0x5a   : > { %s1269_s0 = scalar_lea.hbm %s921_s6, 768  ;;  %s1244_s28 = scalar_lea.hbm %s1706_s2, 1536 }
  0x5b   : > { %p1240_p11 = scmp.ne.s32.totalorder %s1565_s1, %s1269_s0  ;;  %p1245_p4 = scmp.lt.u32.totalorder %s1565_s1, %s1706_s2 }
  0x5c   : > { %p1246_p6 = scmp.lt.u32.totalorder %s1244_s28, %s1269_s0  ;;  %p1248_p8 = scmp.lt.u32.totalorder %s1269_s0, %s1565_s1 }
  0x5d   : > { %p1242_p5 = pnand %p1240_p11, %p1488_p3 }
  0x5e   : > { %p1247_p7 = por %p1246_p6, %p1245_p4 }
  0x5f   : > { %p1243_p2 = pneg %p1242_p5 }
  0x60   : > { %p1249_p9 = por %p1248_p8, %p1247_p7 }
  0x62   : > { %p1250_p12 = pnand %p1249_p9, %p1243_p2 }
  0x64   : > { %1253 = shalt.err (!%p1250_p12)
}
  0x65   : > { %s1254_s29 = scalar_lea.vmem %s1567_s9, 256  ;;  %s1362_s16 = smov [#allocation11]  }
  0x66   : > { %p1255_p1 = scmp.ne.s32.totalorder %s1567_s9, %s1254_s29  ;;  %s1259_s10 = sshll.u32 %s1362_s16, 4  ;;  %s1260_s10 = int_to_ptr.vmem [resolvable:$false] %s1259_s10 }
  0x67   : > { %s1261_s5 = scalar_lea.vmem %s1260_s10, 512  ;;  %p1262_p11 = scmp.lt.s32.totalorder %s1567_s9, %s1260_s10 }
  0x68   : > { %p1257_p10 = pnand %p1255_p1, %p1488_p3  ;;  %p1263_p5 = scmp.lt.s32.totalorder %s1261_s5, %s1254_s29 }
  0x6a   : > { %p1258_p13 = pneg %p1257_p10  ;;  %p1264_p4 = por %p1263_p5, %p1262_p11 }
  0x6c   : > { %p1265_p6 = pnand %p1264_p4, %p1258_p13 }
  0x6e   : > { %1268 = shalt.err (!%p1265_p6)
}
  0x6f   : > { %1099 = dma.hbm_to_vmem [thread:$0]  (!%p1468_p0), %s1565_s1, 256, %s1567_s9, %s1483_s19, %s1733_s21, %s1733_s21, %s1732_s20  }
  0x70   : > { %p1734_p3 = scmp.ne.s32.totalorder %s1729_s7, 0 }
  0x71   : > { %s1596_s0 = sand.u32 (!%p1734_p3), 1, %s1340_s13   ;;  %p1735_p2 = scmp.ne.s32.totalorder (!%p1734_p3), %s1722_s24, 0 }
  0x72   : > { %262 = sbr.rel (%p1734_p3) target bundleno = 759 (0x2f7), region = 32  ;;  %s1599_s22 = sshll.u32 (!%p1734_p3), %s1596_s0, 4 }
  0x73   : > { %s265_s4 = scalar_lea.sflag (!%p1734_p3), [#allocation7], %s1596_s0  ;;  %s268_s6 = scalar_lea.vmem (!%p1734_p3), [#allocation6], %s1599_s22 }
  0x79   : > { %1323 = dma.done.wait (%p1735_p2), %s265_s4, 256  }
  0x7a   : > { %1325 = vsyncadd (%p1735_p2), %s265_s4, 4294967040  ;;  %s273_s19 = sand.u32 1, %s1421_s18   ;;  %s277_s20 = scalar_lea.vmem [#allocation9], %s1599_s22 }
  0x7b   : > { %s274_s7 = scalar_lea.sflag [#allocation10], %s273_s19 }
  0x7c   : > { %1327 = dma.done.wait (%p1735_p2), %s274_s7, 512  }
  0x7d   : > { %1329 = vsyncadd (%p1735_p2), %s274_s7, 4294966784  ;;  %v343_v0 = vld [vmem:[%s277_s20] sm:$0xff]  ;;  %vm331_vm0 = vcmask 130048   ;;  %v328_v3 = vld [vmem:[%s268_s6 + $0x8] sm:$0xff]  ;;  %vm379_vm1 = vcmask 64512   ;;  %vm334_vm2 = vcmask 122880   ;;  %v605_v22 = vlaneseq }
  0x7e   : > { %v327_v1 = vld [vmem:[%s268_s6] sm:$0xff]  ;;  %347 = vxpose.xlu0.b32.start.end [1/1] (short) (narrow) %v343_v0, 16  ;;  %v330_v4 = vmul.f32 0.35355338, %v328_v3  ;;  %v344_v5 = vld [vmem:[%s277_s20 + $0x8] sm:$0xff]  ;;  %v1363_v12 = vmov -inf  }
  0x7f   : > { %v329_v2 = vmul.f32 0.35355338, %v327_v1  ;;  %335 = vst.msk [vmem:[#allocation3] sm:$0x1] %vm334_vm2, %v1363_v12  ;;  %336 = vst.msk [vmem:[#allocation3 + $0x1] sm:$0x1] %vm334_vm2, %v1363_v12 }
  0x80   : > { %333 = vst.msk [vmem:[#allocation2 + $0x8] sm:$0xff] %vm331_vm0, %v330_v4  ;;  %v1364_v13 = vmov 0.0   ;;  %v1365_v14 = vmov 0.0|0.0   ;;  %vm1366_vm3 = vmmov 0   ;;  %v606_v29 = vshrl.u32 %v605_v22, 7  ;;  %s286_s18 = scalar_lea.vmem [#allocation11], %s1599_s22 }
  0x81   : > { %332 = vst.msk [vmem:[#allocation2] sm:$0xff] %vm331_vm0, %v329_v2  ;;  %339 = vst.msk [vmem:[#allocation5] sm:$0xff] %vm331_vm0, %v1364_v13  ;;  %v345_v2 = vld [vmem:[%s286_s18] sm:$0xff]  ;;  %s318_s24 = scalar_lea.vmem [#allocation12], %s1599_s22  ;;  %s1038_s21 = sshll.u32 %s1348_s15, 8 }
  0x82   : > { %337 = vst.msk [vmem:[#allocation4] sm:$0x1] %vm334_vm2, %v1364_v13  ;;  %338 = vst.msk [vmem:[#allocation4 + $0x1] sm:$0x1] %vm334_vm2, %v1364_v13  ;;  %v1625_v35 = vsub.s32 0, %v606_v29  ;;  %s864_s23 = sshll.u32 %s318_s24, 4  ;;  %s1652_s8 = scalar_lea.hbm %s1707_s3, %s1038_s21  ;;  %s1654_s23 = int_to_ptr.vmem [resolvable:$true] %s864_s23 }
  0x83   : > { %461 = vxpose.xlu0.b32.start.end [1/1] (short) (narrow) %v344_v5, 16  ;;  %340 = vst.msk [vmem:[#allocation5 + $0x8] sm:$0xff] %vm331_vm0, %v1364_v13  ;;  %s848_s28 = scalar_lea.sflag [#allocation8], %s1596_s0  ;;  %s1270_s11 = scalar_lea.vmem %s1654_s23, 256 }
  0x84   : > { %p1271_p0 = scmp.ne.s32.totalorder %s1654_s23, %s1270_s11  ;;  %p1736_p7 = scmp.ne.s32.totalorder %s1723_s25, 0 }
  0x85   : > { %s1367_s15 = smov [#allocation12]  }
  0x86   : > { %v574_v33 = vld [vmem:[#allocation3] sm:$0x1]  ;;  %v575_v46 = vld [vmem:[#allocation3 + $0x1] sm:$0x1]  ;;  %p1272_p8 = pnand %p1271_p0, %p1736_p7  ;;  %s1274_s30 = sshll.u32 %s1367_s15, 4  ;;  %s1275_s30 = int_to_ptr.vmem [resolvable:$false] %s1274_s30 }
  0x87   : > { %v342_v7 = vld [vmem:[#allocation2 + $0x8] sm:$0xff]  ;;  %s1276_s29 = scalar_lea.vmem %s1275_s30, 512  ;;  %p1277_p12 = scmp.lt.s32.totalorder %s1654_s23, %s1275_s30 }
  0x88   : > { %v341_v6 = vld [vmem:[#allocation2] sm:$0xff]  ;;  %1056 = vmatprep.subr.mxu1 %v342_v7  ;;  %p1273_p9 = pneg %p1272_p8  ;;  %p1278_p1 = scmp.lt.s32.totalorder %s1276_s29, %s1270_s11 }
  0x89   : > { %1051 = vmatprep.subr.mxu0 %v341_v6  ;;  %1057 = vmatpush3.msra.mxu1 %v342_v7 }
  0x8a   : > { %1052 = vmatpush3.msra.mxu0 %v341_v6  ;;  %1078 = vmatprep.subr.bf16.mxu1 %v1365_v14  ;;  %p1279_p10 = por %p1278_p1, %p1277_p12 }
  0x8b   : > { %1075 = vmatprep.subr.bf16.mxu0 %v1365_v14 }
  0x8c   : > { %p1280_p13 = pnand %p1279_p10, %p1273_p9 }
  0xfe   : > { %v363_v8 = vpop.trf.xlu0 }
  0xff   : > { %1053 = vmatprep.mubr.msk.f32.mxu0 %vm379_vm1, %v363_v8 }
 0x102   : > { %v364_v9 = vpop.trf.xlu0 }
 0x103   : > { %1054 = vmatmul.mubr.msk.f32.vlgmr.msra.gmra.mrb[0].mxu0 %vm379_vm1, %v364_v9 }
 0x104   : > { %1065 = vmatprep.mubr.msk.f32.mxu0 %vm1366_vm3, %v1364_v13 }
 0x106   : > { %v477_v10 = vpop.trf.xlu0 }
 0x107   : > { %1058 = vmatprep.mubr.msk.f32.mxu1 %vm379_vm1, %v477_v10 }
 0x10a   : > { %v478_v11 = vpop.trf.xlu0 }
 0x10b   : > { %1059 = vmatmul.mubr.msk.f32.vlgmr.msra.gmra.mrb[0].mxu1 %vm379_vm1, %v478_v11 }
 0x10c   : > { %1072 = vmatprep.mubr.msk.f32.mxu1 %vm1366_vm3, %v1364_v13 }
 0x1d6   : > { %v1055_v15 = vpop.f32.mrb[0].mxu0 }
 0x1d7   : > { %v578_v16 = vsel %vm331_vm0, %v1055_v15, -inf  ;;  %v452_v17 = vpop.f32.mrb[1].mxu0 }
 0x1d8   : > { %v577_v18 = vsel %vm331_vm0, %v452_v17, -inf }
 0x1d9   : > { %v579_v19 = vmax.f32 %v577_v18, %v578_v16  ;;  %v346_v16 = vld [vmem:[%s286_s18 + $0x8] sm:$0xff] }
 0x1db   : > { %v580_v20 = vrot.slane %v579_v19, 4 }
 0x1dd   : > { %v581_v21 = vmax.f32 %v579_v19, %v580_v20 }
 0x1de   : > { %v1060_v23 = vpop.f32.mrb[0].mxu1 }
 0x1df   : > { %v582_v24 = vrot.slane %v581_v21, 2  ;;  %v587_v25 = vsel %vm331_vm0, %v1060_v23, -inf  ;;  %v565_v26 = vpop.f32.mrb[1].mxu1 }
 0x1e0   : > { %v586_v27 = vsel %vm331_vm0, %v565_v26, -inf }
 0x1e1   : > { %v583_v28 = vmax.f32 %v581_v21, %v582_v24  ;;  %v588_v30 = vmax.f32 %v586_v27, %v587_v25  ;;  %v628_v25 = vld [vmem:[#allocation4 + $0x1] sm:$0x1] }
 0x1e3   : > { %v584_v31 = vrot.slane %v583_v28, 1  ;;  %v589_v32 = vrot.slane %v588_v30, 4 }
 0x1e5   : > { %v585_v34 = vmax.f32 %v583_v28, %v584_v31  ;;  %v590_v36 = vmax.f32 %v588_v30, %v589_v32  ;;  %v802_v31 = vld [vmem:[#allocation5] sm:$0xff] }
 0x1e7   : > { %v595_v37 = vmax.f32 %v574_v33, %v585_v34  ;;  %v591_v38 = vrot.slane %v590_v36, 2 }
 0x1e9   : > { %v597_v39 = vsub.f32 %v574_v33, %v595_v37  ;;  %v608_v40 = vrot.slane %v595_v37, %v1625_v35  ;;  %654 = vst.msk [vmem:[#allocation3] sm:$0x1] %vm334_vm2, %v595_v37  ;;  %v592_v41 = vmax.f32 %v590_v36, %v591_v38  ;;  %v803_v38 = vld [vmem:[#allocation5 + $0x8] sm:$0xff] }
 0x1eb   : > { %v599_v42 = vmul.f32 1.442695, %v597_v39  ;;  %v615_v43 = vsub.f32 %v452_v17, %v608_v40  ;;  %v616_v44 = vsub.f32 %v1055_v15, %v608_v40  ;;  %v593_v45 = vrot.slane %v592_v41, 1  ;;  %v627_v15 = vld [vmem:[#allocation4] sm:$0x1] }
 0x1ed   : > { %1162 = vpow2.f32 %v599_v42  ;;  %v619_v47 = vmul.f32 1.442695, %v615_v43  ;;  %v621_v48 = vmul.f32 1.442695, %v616_v44  ;;  %v594_v49 = vmax.f32 %v592_v41, %v593_v45 }
 0x1ef   : > { %1164 = vpow2.f32 %v619_v47  ;;  %v596_v50 = vmax.f32 %v575_v46, %v594_v49 }
 0x1f0   : > { %1166 = vpow2.f32 %v621_v48 }
 0x1f1   : > { %v598_v51 = vsub.f32 %v575_v46, %v596_v50  ;;  %v612_v52 = vrot.slane %v596_v50, %v1625_v35  ;;  %655 = vst.msk [vmem:[#allocation3 + $0x1] sm:$0x1] %vm334_vm2, %v596_v50 }
 0x1f3   : > { %v601_v53 = vmul.f32 1.442695, %v598_v51  ;;  %v617_v54 = vsub.f32 %v565_v26, %v612_v52  ;;  %v618_v55 = vsub.f32 %v1060_v23, %v612_v52 }
 0x1f5   : > { %1168 = vpow2.f32 %v601_v53  ;;  %v623_v56 = vmul.f32 1.442695, %v617_v54  ;;  %v625_v57 = vmul.f32 1.442695, %v618_v55 }
 0x1f7   : > { %v1163_v58 = vpop.eup %1162  ;;  %1170 = vpow2.f32 %v623_v56 }
 0x1f8   : > { %1172 = vpow2.f32 %v625_v57  ;;  %v809_v59 = vrot.slane %v1163_v58, %v1625_v35  ;;  %v629_v21 = vmul.f32 %v1163_v58, %v627_v15 }
 0x1f9   : > { %v1165_v60 = vpop.eup %1164 }
 0x1fa   : > { %v1167_v61 = vpop.eup %1166  ;;  %v631_v62 = vsel %vm331_vm0, %v1165_v60, 0.0  ;;  %v816_v32 = vmul.f32 %v809_v59, %v802_v31 }
 0x1fb   : > { %v632_v63 = vsel %vm331_vm0, %v1167_v61, 0.0  ;;  %v1076_v0 = vpack.c.bf16 %v1167_v61, %v1165_v60 }
 0x1fc   : > { %v633_v1 = vadd.f32 %v632_v63, %v631_v62 }
 0x1fd   : > { %1077 = vmatpush3.bf16.msra.mxu0 %v1076_v0 }
 0x1fe   : > { %v634_v3 = vrot.slane %v633_v1, 4 }
 0x1ff   : > { %v1169_v4 = vpop.eup %1168 }
 0x200   : > { %v635_v5 = vadd.f32 %v634_v3, %v633_v1  ;;  %1066 = vmatmul.mubr.msk.f32.vlgmr.msra.gmra.mrb[2].mxu0 %vm331_vm0, %v345_v2  ;;  %v813_v6 = vrot.slane %v1169_v4, %v1625_v35  ;;  %v630_v28 = vmul.f32 %v1169_v4, %v628_v25 }
 0x201   : > { %v1171_v7 = vpop.eup %1170 }
 0x202   : > { %v1173_v8 = vpop.eup %1172  ;;  %v636_v9 = vrot.slane %v635_v5, 2  ;;  %v640_v10 = vsel %vm331_vm0, %v1171_v7, 0.0  ;;  %v817_v40 = vmul.f32 %v813_v6, %v803_v38 }
 0x203   : > { %v641_v11 = vsel %vm331_vm0, %v1173_v8, 0.0  ;;  %v1079_v12 = vpack.c.bf16 %v1173_v8, %v1171_v7 }
 0x204   : > { %v637_v13 = vadd.f32 %v636_v9, %v635_v5  ;;  %v642_v14 = vadd.f32 %v641_v11, %v640_v10 }
 0x205   : > { %1080 = vmatpush3.bf16.msra.mxu1 %v1079_v12 }
 0x206   : > { %v638_v17 = vrot.slane %v637_v13, 1  ;;  %v643_v18 = vrot.slane %v642_v14, 4 }
 0x208   : > { %v639_v19 = vadd.f32 %v638_v17, %v637_v13  ;;  %v644_v20 = vadd.f32 %v643_v18, %v642_v14  ;;  %1073 = vmatmul.mubr.msk.f32.vlgmr.msra.gmra.mrb[2].mxu1 %vm331_vm0, %v346_v16 }
 0x20a   : > { %v645_v22 = vrot.slane %v644_v20, 2  ;;  %v649_v23 = vadd.f32 %v639_v19, %v629_v21 }
 0x20c   : > { %v646_v24 = vadd.f32 %v645_v22, %v644_v20  ;;  %652 = vst.msk [vmem:[#allocation4] sm:$0x1] %vm334_vm2, %v649_v23 }
 0x20e   : > { %v647_v26 = vrot.slane %v646_v24, 1 }
 0x210   : > { %v648_v27 = vadd.f32 %v647_v26, %v646_v24 }
 0x212   : > { %v650_v29 = vadd.f32 %v648_v27, %v630_v28 }
 0x213   : > { %v825_v30 = vld [vmem:[#allocation4] sm:$0x1] }
 0x214   : > { %653 = vst.msk [vmem:[#allocation4 + $0x1] sm:$0x1] %vm334_vm2, %v650_v29  ;;  %1174 = vrcp.f32 %v825_v30 }
 0x21b   : > { %v826_v37 = vld [vmem:[#allocation4 + $0x1] sm:$0x1] }
 0x21c   : > { %1176 = vrcp.f32 %v826_v37 }
 0x21e   : > { %v1175_v39 = vpop.eup %1174 }
 0x21f   : > { %v836_v44 = vrot.slane %v1175_v39, %v1625_v35 }
 0x226   : > { %v1177_v47 = vpop.eup %1176 }
 0x227   : > { %v840_v48 = vrot.slane %v1177_v47, %v1625_v35 }
 0x2d3   : > { %v725_v33 = vpop.f32.mrb[2].mxu0 }
 0x2d4   : > { %v818_v34 = vadd.f32 %v816_v32, %v725_v33  ;;  %v1067_v36 = vpop.f32.mrb[3].mxu0 }
 0x2d6   : > { %820 = vst.msk [vmem:[#allocation5] sm:$0xff] %vm331_vm0, %v818_v34 }
 0x2db   : > { %v798_v41 = vpop.f32.mrb[2].mxu1 }
 0x2dc   : > { %v819_v42 = vadd.f32 %v817_v40, %v798_v41  ;;  %v1074_v43 = vpop.f32.mrb[3].mxu1 }
 0x2dd   : > { %v829_v45 = vld [vmem:[#allocation5] sm:$0xff] }
 0x2de   : > { %821 = vst.msk [vmem:[#allocation5 + $0x8] sm:$0xff] %vm331_vm0, %v819_v42  ;;  %v843_v46 = vmul.f32 %v836_v44, %v829_v45 }
 0x2e0   : > { %845 = vst.msk [vmem:[%s318_s24] sm:$0xff] %vm331_vm0, %v843_v46 }
 0x2e5   : > { %v830_v49 = vld [vmem:[#allocation5 + $0x8] sm:$0xff] }
 0x2e6   : > { %v844_v50 = vmul.f32 %v840_v48, %v830_v49 }
 0x2e8   : > { %846 = vst.msk [vmem:[%s318_s24 + $0x8] sm:$0xff] %vm331_vm0, %v844_v50 }
 0x2e9   : > { %1283 = shalt.err (!%p1280_p13)
}
 0x2ea   : > { %s1284_s16 = scalar_lea.hbm %s1652_s8, 256  ;;  %s1288_s22 = scalar_lea.hbm %s1707_s3, 512 }
 0x2eb   : > { %p1285_p11 = scmp.ne.s32.totalorder %s1652_s8, %s1284_s16  ;;  %p1289_p6 = scmp.lt.u32.totalorder %s1652_s8, %s1707_s3 }
 0x2ec   : > { %p1290_p3 = scmp.lt.u32.totalorder %s1288_s22, %s1284_s16  ;;  %p1292_p0 = scmp.lt.u32.totalorder %s1284_s16, %s1652_s8 }
 0x2ed   : > { %p1286_p5 = pnand %p1285_p11, %p1736_p7 }
 0x2ee   : > { %p1291_p2 = por %p1290_p3, %p1289_p6 }
 0x2ef   : > { %p1287_p4 = pneg %p1286_p5 }
 0x2f0   : > { %p1293_p8 = por %p1292_p0, %p1291_p2 }
 0x2f2   : > { %p1294_p9 = pnand %p1293_p8, %p1287_p4 }
 0x2f4   : > { %1297 = shalt.err (!%p1294_p9)
}
 0x2f5   : > { %s1368_s19 = smov 128   ;;  %s1369_s7 = smov 8  }
 0x2f6   : > { %1088 = dma.vmem_to_hbm [thread:$0]  (%p1736_p7), %s1654_s23, 256, %s1652_s8, %s848_s28, %s1368_s19, %s1368_s19, %s1369_s7  }
 0x2f7 PF: > { %s879_s20 = sand.u32 1, %s1336_s12   ;;  %p1737_p12 = scmp.ne.s32.totalorder %s1724_s27, 0 }
 0x2f8   : > { %p1738_p1 = scmp.ge.s32.totalorder %s1356_s17, 2  ;;  %s880_s18 = scalar_lea.sflag [#allocation8], %s879_s20 }
 0x2fa   : > { %p1101_p10 = pnand %p1738_p1, %p1737_p12 }
 0x2fc   : > { %1331 = dma.done.wait (!%p1101_p10), %s880_s18, 256  }
 0x2fd   : > { %1333 = vsyncadd (!%p1101_p10), %s880_s18, 4294967040  ;;  %s22_s17 = sadd.s32 1, %s1356_s17   ;;  %s1739_s15 = sld [smem:[#allocation16_spill]] }
 0x2fe   : > { %p19_p13 = scmp.ge.s32.totalorder %s22_s17, 4   ;;  %s1740_s16 = sld [smem:[#allocation17_spill]] }
 0x2ff   : > { %s1741_s12 = smov %s1340_s13  ;;  %s1742_s13 = smov %s1344_s14 }
 0x300   : > { %s1743_s14 = smov %s1450_s26  ;;  %21 = sbr.rel (!%p19_p13) target bundleno = 11 (0xb), region = 109 }
 0x307   :  { %885 = vsyncpa [#allocation7], 1 }
 0x308   :  { %887 = vsyncpa [#allocation7 + $0x1], 1 }
 0x309   :  { %888 = vsyncpa [#allocation10], 1 }
 0x30a   :  { %890 = vsyncpa [#allocation10 + $0x1], 1 }
 0x30b   :  { %891 = vsyncpa [#allocation8], 1 }
 0x30c   :  { %893 = vsyncpa [#allocation8 + $0x1], 1 }

</bundles_post_ra>
